<compile_context>
chip_gen: v5e
topology: v5e:2x2
jax: 0.10.0
libtpu: 0.0.40
codegen_flags: <defaults>
</compile_context>

<pallas_src>
import jax
import jax.numpy as jnp
from jax.experimental import pallas as pl
from jax.experimental.pallas import tpu as pltpu

HIDDEN = 64
OUT = 3
OUT_PAD = 8             # narrow padded output width (block last dim == full array dim)
NEG_BIG = -1e30         # padded-column bias -> exp() underflows to exactly 0 (no NaN)


def _mlp_kernel(x_ref, w1_ref, b1_ref, w2_ref, b2_ref, o_ref):
    # x arrives as f32 and is cast to bf16 in-vreg (VPU cast hides under the DMA);
    # both matmuls run bf16 on the MXU with f32 accumulation.
    x = x_ref[...].astype(jnp.bfloat16)                              # (TILE_B, D)
    h = jnp.dot(x, w1_ref[...], preferred_element_type=jnp.float32)  # (TILE_B, 64)
    h = jnp.maximum(h + b1_ref[...], 0.0)                            # f32

    logits = jnp.dot(h.astype(jnp.bfloat16), w2_ref[...],
                     preferred_element_type=jnp.float32)             # (TILE_B, 8)
    logits = logits + b2_ref[...]

    # Numerically stable log_softmax over the narrow padded width; padded columns
    # (zero weights + -1e30 bias) never win the max and contribute exp() == 0.
    m = jnp.max(logits, axis=-1, keepdims=True)
    shifted = logits - m
    lse = jnp.log(jnp.sum(jnp.exp(shifted), axis=-1, keepdims=True))
    o_ref[...] = shifted - lse


def net_forward(x, w1t, b1, w2t, b2, *, tile_b=2048):
    """x: [B, D] f32; w1t: [D, 64]; b1: [64]/[1,64]; w2t: [64, 3]; b2: [3]/[1,3].

    Returns log_softmax(relu(x @ w1t + b1) @ w2t + b2) with shape [B, 3] (f32).
    """
    B, D = x.shape

    # --- parameter prep (tiny, once per call; weights stay VMEM-resident) ---
    w1b = w1t.astype(jnp.bfloat16)                                   # (D, 64) bf16
    b1r = b1.reshape(1, HIDDEN).astype(jnp.float32)                  # (1, 64)  f32
    w2p = jnp.zeros((HIDDEN, OUT_PAD), jnp.bfloat16).at[:, :OUT].set(
        w2t.astype(jnp.bfloat16))                                    # (64, 8)  bf16
    b2p = jnp.full((1, OUT_PAD), NEG_BIG, jnp.float32).at[:, :OUT].set(
        b2.reshape(1, OUT).astype(jnp.float32))                      # (1, 8)   f32

    # --- batch tiling: TILE_B multiple of 8; no explicit pad (Pallas masks the
    # ragged last block: OOB rows are read as garbage but never written back) ---
    b_rounded = ((B + 7) // 8) * 8
    tile_b = max(8, min(int(tile_b), b_rounded))
    tile_b = ((tile_b + 7) // 8) * 8
    # v7x megacore: ensure >= 2 grid steps when the batch is big enough so both
    # TensorCores get work (harmless extra step on single-TC v5e/v6e).
    if pl.cdiv(b_rounded, tile_b) == 1 and b_rounded >= 16:
        tile_b = ((b_rounded // 2 + 7) // 8) * 8

    out = pl.pallas_call(
        _mlp_kernel,
        out_shape=jax.ShapeDtypeStruct((B, OUT_PAD), jnp.float32),
        grid=(pl.cdiv(B, tile_b),),
        in_specs=[
            pl.BlockSpec((tile_b, D), lambda i: (i, 0)),             # x tile, pipelined
            pl.BlockSpec((D, HIDDEN), lambda i: (0, 0)),             # resident weights
            pl.BlockSpec((1, HIDDEN), lambda i: (0, 0)),
            pl.BlockSpec((HIDDEN, OUT_PAD), lambda i: (0, 0)),
            pl.BlockSpec((1, OUT_PAD), lambda i: (0, 0)),
        ],
        out_specs=pl.BlockSpec((tile_b, OUT_PAD), lambda i: (i, 0)),
        compiler_params=pltpu.CompilerParams(
            dimension_semantics=("parallel",),                       # megacore on v7x
        ),
    )(x, w1b, b1r, w2p, b2p)

    return out[:, :OUT]


def _reference_bf16(x, w1t, b1, w2t, b2):
    # Mirrors the kernel's numerics: bf16 matmul inputs, f32 accumulation, f32 rest.
    h = jnp.dot(x.astype(jnp.bfloat16), w1t.astype(jnp.bfloat16),
                preferred_element_type=jnp.float32) + b1.reshape(1, -1)
    h = jnp.maximum(h, 0.0)
    logits = jnp.dot(h.astype(jnp.bfloat16), w2t.astype(jnp.bfloat16),
                     preferred_element_type=jnp.float32) + b2.reshape(1, -1)
    return jax.nn.log_softmax(logits, axis=1)


def _reference_f32(x, w1t, b1, w2t, b2):
    # True f32 PyTorch-equivalent numerics (HIGHEST precision matmuls).
    h = jnp.maximum(
        jnp.dot(x, w1t, precision=jax.lax.Precision.HIGHEST) + b1.reshape(1, -1), 0.0)
    logits = jnp.dot(h, w2t, precision=jax.lax.Precision.HIGHEST) + b2.reshape(1, -1)
    return jax.nn.log_softmax(logits, axis=1)


if __name__ == "__main__":
    key = jax.random.PRNGKey(0)
    B, D = 8, 32  # batch=8, input_size=32 (small demo shapes)

    k_x, k_w1, k_b1, k_w2, k_b2, k_x2 = jax.random.split(key, 6)
    x = jax.random.normal(k_x, (B, D), dtype=jnp.float32)

    # Synthetic parameters with the same shapes as nn.Linear(D,64) / nn.Linear(64,3)
    # (pre-transposed weights: [in, out]).
    w1t = jax.random.normal(k_w1, (D, HIDDEN), dtype=jnp.float32) * 0.1
    b1 = jax.random.normal(k_b1, (1, HIDDEN), dtype=jnp.float32) * 0.1
    w2t = jax.random.normal(k_w2, (HIDDEN, OUT), dtype=jnp.float32) * 0.1
    b2 = jax.random.normal(k_b2, (1, OUT), dtype=jnp.float32) * 0.1

    out = jax.block_until_ready(net_forward(x, w1t, b1, w2t, b2))
    assert out.shape == (B, OUT)
    assert jnp.allclose(out, _reference_bf16(x, w1t, b1, w2t, b2), atol=1e-3, rtol=1e-3)
    # bf16 matmul inputs deviate slightly from true f32 PyTorch numerics; at D=32 the
    # log-prob error stays well under 5e-2.
    assert jnp.allclose(out, _reference_f32(x, w1t, b1, w2t, b2), atol=5e-2)

    # Tail-handling check: batch not a multiple of 8 / tile size (forces ragged block).
    B2 = 13
    x2 = jax.random.normal(k_x2, (B2, D), dtype=jnp.float32)
    out2 = jax.block_until_ready(net_forward(x2, w1t, b1, w2t, b2))
    assert out2.shape == (B2, OUT)
    assert jnp.allclose(out2, _reference_bf16(x2, w1t, b1, w2t, b2), atol=1e-3, rtol=1e-3)
    assert jnp.allclose(out2, _reference_f32(x2, w1t, b1, w2t, b2), atol=5e-2)

    print("KERNEL_OK")
</pallas_src>

<mosaic_0001>
module attributes {stable_mosaic.version = 11 : i64} {
  func.func @_mlp_kernel(%arg0: i32, %arg1: memref<8x32xf32, #tpu.memory_space<vmem>>, %arg2: memref<32x64xbf16, #tpu.memory_space<vmem>>, %arg3: memref<1x64xf32, #tpu.memory_space<vmem>>, %arg4: memref<64x8xbf16, #tpu.memory_space<vmem>>, %arg5: memref<1x8xf32, #tpu.memory_space<vmem>>, %arg6: memref<8x8xf32, #tpu.memory_space<vmem>>) attributes {dimension_semantics = [#tpu.dimension_semantics<parallel>], iteration_bounds = array<i64: 1>, scalar_prefetch = 0 : i64, scratch_operands = 0 : i64, tpu.core_type = #tpu.core_type<tc>, window_params = [{transform_indices = @transform_0, window_bounds = array<i64: 8, 32>}, {pipeline_mode = #tpu.pipeline_mode<synchronous>, transform_indices = @transform_1, window_bounds = array<i64: 32, 64>}, {pipeline_mode = #tpu.pipeline_mode<synchronous>, transform_indices = @transform_2, window_bounds = array<i64: 1, 64>}, {pipeline_mode = #tpu.pipeline_mode<synchronous>, transform_indices = @transform_3, window_bounds = array<i64: 64, 8>}, {pipeline_mode = #tpu.pipeline_mode<synchronous>, transform_indices = @transform_4, window_bounds = array<i64: 1, 8>}, {transform_indices = @transform_5, window_bounds = array<i64: 8, 8>}]} {
    %c0 = arith.constant 0 : index
    %c0_0 = arith.constant 0 : index
    %0 = vector.load %arg1[%c0, %c0_0] : memref<8x32xf32, #tpu.memory_space<vmem>>, vector<8x32xf32>
    %1 = arith.truncf %0 : vector<8x32xf32> to vector<8x32xbf16>
    %c0_1 = arith.constant 0 : index
    %c0_2 = arith.constant 0 : index
    %2 = vector.load %arg2[%c0_1, %c0_2] : memref<32x64xbf16, #tpu.memory_space<vmem>>, vector<32x64xbf16>
    %cst = arith.constant dense<0.000000e+00> : vector<8x64xf32>
    %3 = tpu.matmul %1, %2, %cst {dimension_numbers = #tpu.dot_dimension_numbers<[1], [0], [0], [1], [0, 0, 1, 1], [], []>} : vector<8x32xbf16>, vector<32x64xbf16>, vector<8x64xf32> -> vector<8x64xf32>
    %c0_3 = arith.constant 0 : index
    %c0_4 = arith.constant 0 : index
    %4 = vector.load %arg3[%c0_3, %c0_4] : memref<1x64xf32, #tpu.memory_space<vmem>>, vector<1x64xf32>
    %5 = vector.broadcast %4 : vector<1x64xf32> to vector<8x64xf32>
    %6 = arith.addf %3, %5 : vector<8x64xf32>
    %cst_5 = arith.constant 0.000000e+00 : f32
    %7 = vector.broadcast %cst_5 : f32 to vector<8x64xf32>
    %8 = arith.maximumf %6, %7 : vector<8x64xf32>
    %9 = arith.truncf %8 : vector<8x64xf32> to vector<8x64xbf16>
    %c0_6 = arith.constant 0 : index
    %c0_7 = arith.constant 0 : index
    %10 = vector.load %arg4[%c0_6, %c0_7] : memref<64x8xbf16, #tpu.memory_space<vmem>>, vector<64x8xbf16>
    %cst_8 = arith.constant dense<0.000000e+00> : vector<8x8xf32>
    %11 = tpu.matmul %9, %10, %cst_8 {dimension_numbers = #tpu.dot_dimension_numbers<[1], [0], [0], [1], [0, 0, 1, 1], [], []>} : vector<8x64xbf16>, vector<64x8xbf16>, vector<8x8xf32> -> vector<8x8xf32>
    %c0_9 = arith.constant 0 : index
    %c0_10 = arith.constant 0 : index
    %12 = vector.load %arg5[%c0_9, %c0_10] : memref<1x8xf32, #tpu.memory_space<vmem>>, vector<1x8xf32>
    %13 = vector.broadcast %12 : vector<1x8xf32> to vector<8x8xf32>
    %14 = arith.addf %11, %13 : vector<8x8xf32>
    %cst_11 = arith.constant dense<0xFF800000> : vector<8xf32>
    %15 = vector.multi_reduction <maximumf>, %14, %cst_11 [1] : vector<8x8xf32> to vector<8xf32>
    %16 = vector.shape_cast %15 : vector<8xf32> to vector<8x1xf32>
    %17 = vector.broadcast %16 : vector<8x1xf32> to vector<8x8xf32>
    %18 = arith.subf %14, %17 : vector<8x8xf32>
    %19 = math.exp %18 : vector<8x8xf32>
    %cst_12 = arith.constant dense<0.000000e+00> : vector<8xf32>
    %20 = vector.multi_reduction <add>, %19, %cst_12 [1] : vector<8x8xf32> to vector<8xf32>
    %21 = vector.shape_cast %20 : vector<8xf32> to vector<8x1xf32>
    %22 = math.log %21 : vector<8x1xf32>
    %23 = vector.broadcast %22 : vector<8x1xf32> to vector<8x8xf32>
    %24 = arith.subf %18, %23 : vector<8x8xf32>
    %c0_13 = arith.constant 0 : index
    %c0_14 = arith.constant 0 : index
    %25 = vector.load %arg6[%c0_13, %c0_14] : memref<8x8xf32, #tpu.memory_space<vmem>>, vector<8x8xf32>
    tpu.vector_store %arg6[%c0_13, %c0_14], %24 {strides = array<i32>} : memref<8x8xf32, #tpu.memory_space<vmem>>, vector<8x8xf32>,
    return
  }
  func.func @transform_0(%arg0: i32) -> (i32, i32) {
    %c0_i32 = arith.constant 0 : i32
    %c0_i32_0 = arith.constant 0 : i32
    return %arg0, %c0_i32 : i32, i32
  }
  func.func @transform_1(%arg0: i32) -> (i32, i32) {
    %c0_i32 = arith.constant 0 : i32
    %c0_i32_0 = arith.constant 0 : i32
    %c0_i32_1 = arith.constant 0 : i32
    return %c0_i32, %c0_i32_0 : i32, i32
  }
  func.func @transform_2(%arg0: i32) -> (i32, i32) {
    %c0_i32 = arith.constant 0 : i32
    %c0_i32_0 = arith.constant 0 : i32
    %c0_i32_1 = arith.constant 0 : i32
    return %c0_i32, %c0_i32_0 : i32, i32
  }
  func.func @transform_3(%arg0: i32) -> (i32, i32) {
    %c0_i32 = arith.constant 0 : i32
    %c0_i32_0 = arith.constant 0 : i32
    %c0_i32_1 = arith.constant 0 : i32
    return %c0_i32, %c0_i32_0 : i32, i32
  }
  func.func @transform_4(%arg0: i32) -> (i32, i32) {
    %c0_i32 = arith.constant 0 : i32
    %c0_i32_0 = arith.constant 0 : i32
    %c0_i32_1 = arith.constant 0 : i32
    return %c0_i32, %c0_i32_0 : i32, i32
  }
  func.func @transform_5(%arg0: i32) -> (i32, i32) {
    %c0_i32 = arith.constant 0 : i32
    %c0_i32_0 = arith.constant 0 : i32
    return %arg0, %c0_i32 : i32, i32
  }
}

</mosaic_0001>

<bundles_post_ra>
// kernel: tpu_custom_call.1
= control target key start
LH: loop header
LB: loop body
LE: loop exit
PB: predicated region body
PF: predicated region fallthrough
CT: control target
= control target key end

     0   :  { %s275_s0 = inlined_call_operand.vmem [shape: f32[8,32], index: 0, kind: input, shape index: {}]   ;;  %s276_s1 = inlined_call_operand.vmem [shape: bf16[32,64], index: 1, kind: input, shape index: {}]   ;;  %s277_s2 = inlined_call_operand.vmem [shape: f32[1,64], index: 2, kind: input, shape index: {}]   ;;  %s278_s3 = inlined_call_operand.vmem [shape: bf16[64,8], index: 3, kind: input, shape index: {}]   ;;  %s279_s4 = inlined_call_operand.vmem [shape: f32[1,8], index: 4, kind: input, shape index: {}]   ;;  %s280_s5 = inlined_call_operand.hbm [shape: f32[8,8], index: 5, kind: output, shape index: {}]  }
   0x1   :  { %v173_v0 = vld [vmem:[%s276_s1 + $0x8] sm:$0xff]  ;;  %v172_v1 = vld [vmem:[%s276_s1] sm:$0xff]  ;;  %v177_v2 = vld [vmem:[%s278_s3 + $0x18] sm:$0xff] }
   0x2   :  { %54 = vmatpush.bf16.msra.mxu0 %v173_v0  ;;  %v22_v3 = vld [vmem:[%s275_s0] sm:$0xff] }
   0x3   :  { %10 = vsyncpa [#allocation3], 0  ;;  %107 = vmatpush.bf16.msra.mxu1 %v177_v2  ;;  %v176_v4 = vld [vmem:[%s278_s3 + $0x10] sm:$0xff]  ;;  %v23_v5 = vpack.c.bf16 %v22_v3, %v22_v3  ;;  %vm44_vm0 = vcmask 261120   ;;  %v175_v6 = vld [vmem:[%s278_s3 + $0x8] sm:$0xff]  ;;  %vm99_vm1 = vcmask 523264  }
   0x4   :  { %v174_v7 = vld [vmem:[%s278_s3] sm:$0xff]  ;;  %vm116_vm2 = vcmask 64512   ;;  %s137_s10 = sshll.u32 %s280_s5, 4  ;;  %s138_s10 = int_to_ptr.hbm [resolvable:$true] %s137_s10 }
   0x5   :  { %v179_v8 = vld [vmem:[%s277_s2] ss:$0 sm:$0xff]  ;;  %s211_s2 = smov [#allocation2]  }
   0x6   :  { %55 = vmatpush.bf16.msra.mxu0 %v172_v1  ;;  %v180_v14 = vld [vmem:[%s279_s4] ss:$0 sm:$0xff]  ;;  %s135_s3 = sshll.u32 %s211_s2, 4  ;;  %s136_s3 = int_to_ptr.vmem [resolvable:$true] %s135_s3 }
   0x7   :  { %108 = vmatpush.bf16.msra.mxu1 %v176_v4 }
   0x9   :  { %154 = vmatmul.msk.bf16.vlgmr.msra.gmra.mxu0 %vm44_vm0, %v23_v5 }
   0xb   :  { %109 = vmatpush.bf16.msra.mxu1 %v175_v6 }
   0xf   :  { %110 = vmatpush.bf16.msra.mxu1 %v174_v7 }
  0x86   :  { %v57_v9 = vpop.f32.mrf.mxu0 }
  0x87   :  { %v58_v10 = vadd.f32 %v179_v8, %v57_v9 }
  0x89   :  { %v61_v11 = vmax.f32 %v58_v10, 0.0 }
  0x8b   :  { %v62_v12 = vpack.c.bf16 %v61_v11, %v61_v11 }
  0x8d   :  { %171 = vmatmul.msk.bf16.vlgmr.msra.gmra.mxu1 %vm99_vm1, %v62_v12 }
  0x8e   :  { %v59_v13 = vpop.f32.mrf.mxu0 }
 0x10a   :  { %v112_v15 = vpop.f32.mrf.mxu1 }
 0x10b   :  { %v113_v16 = vadd.f32 %v180_v14, %v112_v15 }
 0x10d   :  { %v117_v17 = vsel %vm116_vm2, %v113_v16, -inf }
 0x10e   :  { %118 = vmax.xlane.f32.xlu0 %v117_v17 }
 0x112   :  { %v114_v18 = vpop.f32.mrf.mxu1 }
 0x181   :  { %v119_v19 = vpop.xlane.xlu0 %118 }
 0x182   :  { %v120_v20 = vsub.f32 %v113_v16, %v119_v19 }
 0x184   :  { %v121_v21 = vmul.f32 1.442695, %v120_v20 }
 0x186   :  { %181 = vpow2.f32 %v121_v21 }
 0x18c   :  { %v182_v22 = vpop.eup %181 }
 0x18d   :  { %v123_v23 = vsel %vm116_vm2, %v182_v22, 0.0 }
 0x18e   :  { %124 = vadd.xlane.f32.xlu0 %v123_v23 }
 0x201   :  { %v125_v24 = vpop.xlane.xlu0 %124 }
 0x202   :  { %183 = vlog2.f32 %v125_v24 }
 0x208   :  { %v184_v25 = vpop.eup %183 }
 0x209   :  { %v127_v26 = vmul.f32 0.6931472, %v184_v25 }
 0x20b   :  { %v128_v27 = vsub.f32 %v120_v20, %v127_v26 }
 0x20d   :  { %129 = vst.msk [vmem:[#allocation2] sm:$0xff] %vm116_vm2, %v128_v27 }
 0x20e   :  { %140 = dma.vmem_to_hbm [thread:$0]  %s136_s3, 128, %s138_s10, [#allocation3]  }
 0x20f   :  { %209 = dma.done.wait [#allocation3], 128  }
 0x210   :  { %210 = vsyncadd [#allocation3], 4294967168 }
 0x211   :  { %145 = vsyncpa [#allocation3], 1 }

</bundles_post_ra>
